<compile_context>
chip_gen: v5e
topology: v5e:2x2
jax: 0.10.0
libtpu: 0.0.40
codegen_flags: <defaults>
</compile_context>

<pallas_src>
import jax
import jax.numpy as jnp
from jax.experimental import pallas as pl
from jax.experimental.pallas import tpu as pltpu


def _round_up(x, m):
    return ((x + m - 1) // m) * m


def _patch_embed_kernel(x_ref, w_ref, b_ref, o_ref):
    # x_ref: (K, tl) patch columns, w_ref: (E, K), b_ref: (E, 1), o_ref: (E, tl)
    # NOTE(ragged last L block): the tail columns of x_ref may hold padding /
    # stale data; they only contaminate the matching output columns, which
    # Pallas clips on writeback.  The reduction dim K is always full, so no
    # garbage ever enters a reduction.
    acc = jnp.dot(w_ref[...], x_ref[...], preferred_element_type=jnp.float32)
    o_ref[...] = (acc + b_ref[...]).astype(o_ref.dtype)


def patch_embed3d(x, weight, bias, patch_size=(1, 4, 4),
                  compute_dtype=jnp.bfloat16, out_dtype=None, tl=None):
    """Equivalent of PatchEmbed3D.forward (norm=None).

    x:      (N, C, D, H, W)
    weight: (E, C, pd, ph, pw)   Conv3d weight, kernel == stride == patch_size
    bias:   (E,)
    returns (N, E, D', H', W')

    compute_dtype: dtype of the x / weight MXU operands (accumulation is f32).
        Defaults to bf16 (halves the dominant x read traffic); pass
        jnp.float32 to reproduce the module's f32 numerics exactly.
    """
    pd, ph, pw = patch_size
    N, C, D, H, W = x.shape
    E = weight.shape[0]
    if out_dtype is None:
        out_dtype = x.dtype

    # Cast before pad / patchify so the transpose traffic is also halved.
    if compute_dtype is not None:
        x = x.astype(compute_dtype)
        weight = weight.astype(compute_dtype)

    # Zero-pad trailing spatial dims up to multiples of the patch size
    # (matches the F.pad calls in the module).
    pad_d = (-D) % pd
    pad_h = (-H) % ph
    pad_w = (-W) % pw
    if pad_d or pad_h or pad_w:
        x = jnp.pad(x, ((0, 0), (0, 0), (0, pad_d), (0, pad_h), (0, pad_w)))
    Dp, Hp, Wp = x.shape[2], x.shape[3], x.shape[4]
    Do, Ho, Wo = Dp // pd, Hp // ph, Wp // pw

    K = C * pd * ph * pw
    L = Do * Ho * Wo

    # Patchify in the transposed orientation: Xt[n, k, l] with k flattened in
    # (C, pd, ph, pw) order (== Conv3d weight order) and l in (Do, Ho, Wo)
    # raster order (== the module's output spatial order).
    # TODO(synk): verify in the HLO whether XLA fuses this transpose into the
    #             kernel's input DMA (allow_input_fusion below).  If it stays
    #             materialised in HBM it adds ~N*K*L bytes of write+read; the
    #             fallback is in-kernel patch extraction via a BlockSpec over
    #             the padded x (grid over (N, Do, Ho-tiles)) with the
    #             (C, ph, pw) reorder done in VMEM.
    xt = x.reshape(N, C, Do, pd, Ho, ph, Wo, pw)
    xt = xt.transpose(0, 1, 3, 5, 7, 2, 4, 6)     # (N, C, pd, ph, pw, Do, Ho, Wo)
    xt = xt.reshape(N, K, L)

    w2 = weight.reshape(E, K)                      # (E, K); K NOT padded to 128
    b2 = bias.reshape(E, 1).astype(jnp.float32)    # added in the f32 accumulator

    # Lane tile over L.
    if tl is None:
        tl = 2048
    if L <= tl:
        tl_blk = L                        # full-dim block: legal for any L
    else:
        tl_blk = _round_up(tl, 128)       # lane-aligned; ragged last block is clipped
    grid_l = pl.cdiv(L, tl_blk)

    out = pl.pallas_call(
        _patch_embed_kernel,
        out_shape=jax.ShapeDtypeStruct((N, E, L), out_dtype),
        grid_spec=pltpu.PrefetchScalarGridSpec(
            num_scalar_prefetch=0,
            grid=(N, grid_l),
            in_specs=[
                pl.BlockSpec((None, K, tl_blk), lambda n, l: (n, 0, l)),
                pl.BlockSpec((E, K), lambda n, l: (0, 0)),
                pl.BlockSpec((E, 1), lambda n, l: (0, 0)),
            ],
            out_specs=pl.BlockSpec((None, E, tl_blk), lambda n, l: (n, 0, l)),
        ),
        compiler_params=pltpu.CompilerParams(
            # TODO(synk): on v7x profile both TensorCores; if one sits idle,
            #             add an explicit core-parallel leading grid axis.
            dimension_semantics=("parallel", "parallel"),
            allow_input_fusion=[True, False, False],
        ),
        cost_estimate=pl.CostEstimate(
            flops=2 * N * L * K * E,
            transcendentals=0,
            bytes_accessed=(N * K * L * xt.dtype.itemsize
                            + E * K * w2.dtype.itemsize
                            + E * b2.dtype.itemsize
                            + N * E * L * jnp.dtype(out_dtype).itemsize),
        ),
    )(xt, w2, b2)

    # Free reshape (no data movement): (N, E, L) -> (N, E, D', H', W').
    return out.reshape(N, E, Do, Ho, Wo)


def _reference(x, weight, bias, patch_size):
    """Plain-JAX reference: zero-pad like F.pad, then strided Conv3d (f32)."""
    pd, ph, pw = patch_size
    _, _, D, H, W = x.shape
    x = jnp.pad(x, ((0, 0), (0, 0),
                    (0, (-D) % pd), (0, (-H) % ph), (0, (-W) % pw)))
    E = weight.shape[0]
    return jax.lax.conv_general_dilated(
        x, weight, window_strides=patch_size, padding="VALID",
        dimension_numbers=("NCDHW", "OIDHW", "NCDHW"),
        precision=jax.lax.Precision.HIGHEST,
    ) + bias.reshape(1, E, 1, 1, 1)


if __name__ == "__main__":
    patch_size = (1, 4, 4)
    in_chans, embed_dim = 3, 96

    fwd = jax.jit(patch_embed3d,
                  static_argnames=("patch_size", "compute_dtype", "out_dtype", "tl"))

    key = jax.random.PRNGKey(0)
    kx, kw, kb, kx2 = jax.random.split(key, 4)
    weight = jax.random.normal(
        kw, (embed_dim, in_chans) + patch_size, dtype=jnp.float32) * 0.05
    bias = jax.random.normal(kb, (embed_dim,), dtype=jnp.float32) * 0.05

    # Test 1: f32 compute path (faithful to the PyTorch module), no spatial
    # padding, single L block, batch axis exercised in the grid.
    N, D, H, W = 2, 4, 16, 16
    x = jax.random.normal(kx, (N, in_chans, D, H, W), dtype=jnp.float32)
    out = jax.block_until_ready(
        fwd(x, weight, bias, patch_size=patch_size, compute_dtype=jnp.float32))
    ref = _reference(x, weight, bias, patch_size)
    assert out.shape == ref.shape, (out.shape, ref.shape)
    assert jnp.allclose(out, ref, atol=5e-3, rtol=5e-3)

    # Test 2: default bf16 operands (f32 accumulation), spatial padding
    # triggered, and a small lane tile so the L grid has several steps plus a
    # ragged last block (L = 3*4*24 = 288, tl = 128).
    N2, D2, H2, W2 = 1, 3, 14, 95
    x2 = jax.random.normal(kx2, (N2, in_chans, D2, H2, W2), dtype=jnp.float32)
    out2 = jax.block_until_ready(
        fwd(x2, weight, bias, patch_size=patch_size, tl=128))
    ref2 = _reference(x2, weight, bias, patch_size)
    assert out2.shape == ref2.shape, (out2.shape, ref2.shape)
    assert jnp.allclose(out2, ref2, atol=3e-2, rtol=3e-2)

    print("KERNEL_OK")
</pallas_src>

<mosaic_0001>
module attributes {stable_mosaic.version = 11 : i64} {
  func.func @_patch_embed_kernel(%arg0: i32, %arg1: i32, %arg2: memref<1x48x64xf32, #tpu.memory_space<vmem>>, %arg3: memref<96x48xf32, #tpu.memory_space<vmem>>, %arg4: memref<96x1xf32, #tpu.memory_space<vmem>>, %arg5: memref<1x96x64xf32, #tpu.memory_space<vmem>>) attributes {dimension_semantics = [#tpu.dimension_semantics<parallel>, #tpu.dimension_semantics<parallel>], iteration_bounds = array<i64: 2, 1>, scalar_prefetch = 0 : i64, scratch_operands = 0 : i64, tpu.core_type = #tpu.core_type<tc>, window_params = [{transform_indices = @transform_0, window_bounds = array<i64: 1, 48, 64>}, {pipeline_mode = #tpu.pipeline_mode<synchronous>, transform_indices = @transform_1, window_bounds = array<i64: 96, 48>}, {pipeline_mode = #tpu.pipeline_mode<synchronous>, transform_indices = @transform_2, window_bounds = array<i64: 96, 1>}, {transform_indices = @transform_3, window_bounds = array<i64: 1, 96, 64>}]} {
    %c0 = arith.constant 0 : index
    %c0_0 = arith.constant 0 : index
    %0 = vector.load %arg3[%c0, %c0_0] : memref<96x48xf32, #tpu.memory_space<vmem>>, vector<96x48xf32>
    %c0_1 = arith.constant 0 : index
    %c0_2 = arith.constant 0 : index
    %c0_3 = arith.constant 0 : index
    %1 = vector.load %arg2[%c0_1, %c0_2, %c0_3] : memref<1x48x64xf32, #tpu.memory_space<vmem>>, vector<1x48x64xf32>
    %2 = vector.shape_cast %1 : vector<1x48x64xf32> to vector<48x64xf32>
    %cst = arith.constant dense<0.000000e+00> : vector<96x64xf32>
    %3 = tpu.matmul %0, %2, %cst {dimension_numbers = #tpu.dot_dimension_numbers<[1], [0], [0], [1], [0, 0, 1, 1], [], []>} : vector<96x48xf32>, vector<48x64xf32>, vector<96x64xf32> -> vector<96x64xf32>
    %c0_4 = arith.constant 0 : index
    %c0_5 = arith.constant 0 : index
    %4 = vector.load %arg4[%c0_4, %c0_5] : memref<96x1xf32, #tpu.memory_space<vmem>>, vector<96x1xf32>
    %5 = vector.broadcast %4 : vector<96x1xf32> to vector<96x64xf32>
    %6 = arith.addf %3, %5 : vector<96x64xf32>
    %c0_6 = arith.constant 0 : index
    %c0_7 = arith.constant 0 : index
    %c0_8 = arith.constant 0 : index
    %7 = vector.load %arg5[%c0_6, %c0_7, %c0_8] : memref<1x96x64xf32, #tpu.memory_space<vmem>>, vector<1x96x64xf32>
    %8 = vector.shape_cast %7 : vector<1x96x64xf32> to vector<96x64xf32>
    %9 = vector.shape_cast %6 : vector<96x64xf32> to vector<1x96x64xf32>
    tpu.vector_store %arg5[%c0_6, %c0_7, %c0_8], %9 {strides = array<i32>} : memref<1x96x64xf32, #tpu.memory_space<vmem>>, vector<1x96x64xf32>,
    return
  }
  func.func @transform_0(%arg0: i32, %arg1: i32) -> (i32, i32, i32) {
    %c0_i32 = arith.constant 0 : i32
    %c0_i32_0 = arith.constant 0 : i32
    return %arg0, %c0_i32, %arg1 : i32, i32, i32
  }
  func.func @transform_1(%arg0: i32, %arg1: i32) -> (i32, i32) {
    %c0_i32 = arith.constant 0 : i32
    %c0_i32_0 = arith.constant 0 : i32
    %c0_i32_1 = arith.constant 0 : i32
    return %c0_i32, %c0_i32_0 : i32, i32
  }
  func.func @transform_2(%arg0: i32, %arg1: i32) -> (i32, i32) {
    %c0_i32 = arith.constant 0 : i32
    %c0_i32_0 = arith.constant 0 : i32
    %c0_i32_1 = arith.constant 0 : i32
    return %c0_i32, %c0_i32_0 : i32, i32
  }
  func.func @transform_3(%arg0: i32, %arg1: i32) -> (i32, i32, i32) {
    %c0_i32 = arith.constant 0 : i32
    %c0_i32_0 = arith.constant 0 : i32
    return %arg0, %c0_i32, %arg1 : i32, i32, i32
  }
}

</mosaic_0001>

<bundles_post_ra>
// kernel: patch_embed3d.1
= control target key start
LH: loop header
LB: loop body
LE: loop exit
PB: predicated region body
PF: predicated region fallthrough
CT: control target
= control target key end

     0   :  { %s592_s12 = smov 0   ;;  %s594_s13 = smov 0   ;;  %s739_s0 = inlined_call_operand.vmem [shape: f32[2,48,64], index: 0, kind: input, shape index: {}]   ;;  %s740_s1 = inlined_call_operand.vmem [shape: f32[96,48], index: 1, kind: input, shape index: {}]   ;;  %s741_s2 = inlined_call_operand.vmem [shape: f32[96,1], index: 2, kind: input, shape index: {}]   ;;  %s742_s3 = inlined_call_operand.vmem [shape: f32[2,96,64], index: 3, kind: output, shape index: {}]  }
   0x1   :  { %s596_s14 = smov 0  }
   0x2 LB: > { %s25_s15 = sadd.s32 1, %s565_s13  ;;  %p482_p0 = scmp.ge.s32.totalorder %s569_s14, 1  ;;  %s569_s14 = sphi %s596_s14, %s13_s14   ;;  %s565_s13 = sphi %s594_s13, %s744_s13   ;;  %s561_s12 = sphi %s592_s12, %s743_s12  }
   0x3   : > { %p27_p1 = scmp.ge.s32.totalorder %s25_s15, 2  ;;  %p156_p2 = scmp.lt.s32.totalorder %s569_s14, 3 }
   0x5   : > { %s746_s15 = smov (%p27_p1, %s25_s15), 0  ;;  %p157_p3 = pnand %p482_p0, %p156_p2 }
   0x6   : > { %p186_p4 = scmp.lt.s32.totalorder (!%p157_p3), %s561_s12, 1 }
   0x7   : > { %160 = sbr.rel (%p157_p3) target bundleno = 183 (0xb7), region = 32 }
   0xc   : > { %v222_v0 = vld [vmem:[%s741_s2 + $0x10] sm:$0xff]  ;;  %v220_v1 = vld [vmem:[%s741_s2] sm:$0xff]  ;;  %v571_v2 = vmov 0   ;;  %s748_s12 = smov (!%p186_p4, %s561_s12), 1  ;;  %v223_v6 = vld [vmem:[%s741_s2 + $0x18] sm:$0xff]  ;;  %vm292_vm0 = vcmask 392192  }
   0xd   : > { %545 = vset.pattern.permute.xlu1 %v571_v2  ;;  %544 = vset.pattern.permute.xlu0 %v571_v2  ;;  %s517_s20 = smul.u32 48, %s748_s12  ;;  %v224_v3 = vld [vmem:[%s741_s2 + $0x20] sm:$0xff]  ;;  %v221_v7 = vld [vmem:[%s741_s2 + $0x8] sm:$0xff]  ;;  %v205_v13 = vld [vmem:[%s740_s1 + $0x18] sm:$0xff]  ;;  %vm382_vm1 = vcmask 523264  }
   0xe   : > { %244 = vperm.xlu1 %545, %v222_v0   ;;  %234 = vperm.xlu0 %544, %v220_v1   ;;  %v202_v12 = vld [vmem:[%s740_s1] sm:$0xff]  ;;  %v208_v14 = vld [vmem:[%s740_s1 + $0x30] sm:$0xff]  ;;  %v211_v15 = vld [vmem:[%s740_s1 + $0x48] sm:$0xff]  ;;  %s518_s22 = smul.u32 96, %s748_s12 }
   0xf   : > { %546 = vset.pattern.permute.xlu2 %v571_v2  ;;  %s193_s25 = scalar_lea.vmem %s739_s0, %s517_s20  ;;  %v227_v16 = vld [vmem:[%s741_s2 + $0x38] sm:$0xff]  ;;  %v226_v17 = vld [vmem:[%s741_s2 + $0x30] sm:$0xff]  ;;  %v225_v18 = vld [vmem:[%s741_s2 + $0x28] sm:$0xff] }
  0x10   : > { %254 = vperm.xlu2 %546, %v224_v3   ;;  %v219_v4 = vld [vmem:[%s193_s25 + $0x28] sm:$0xff]  ;;  %v218_v5 = vld [vmem:[%s193_s25 + $0x20] sm:$0xff]  ;;  %v217_v8 = vld [vmem:[%s193_s25 + $0x18] sm:$0xff] }
  0x11   : > { %339 = vmatpush.msra.mxu0 %v219_v4  ;;  %499 = vmatpush.msra.mxu1 %v219_v4  ;;  %v216_v9 = vld [vmem:[%s193_s25 + $0x10] sm:$0xff]  ;;  %v215_v10 = vld [vmem:[%s193_s25 + $0x8] sm:$0xff]  ;;  %v214_v11 = vld [vmem:[%s193_s25] sm:$0xff]  ;;  %s704_s25 = scalar_lea.vmem %s742_s3, %s518_s22 }
  0x12   : > { %500 = vmatpush.msra.mxu2 %v219_v4  ;;  %501 = vmatpush.msra.mxu3 %v219_v4  ;;  %v203_v19 = vld [vmem:[%s740_s1 + $0x8] sm:$0xff]  ;;  %v206_v20 = vld [vmem:[%s740_s1 + $0x20] sm:$0xff]  ;;  %v209_v21 = vld [vmem:[%s740_s1 + $0x38] sm:$0xff] }
  0x13   : > { %340 = vmatpush.msra.mxu0 %v218_v5  ;;  %502 = vmatpush.msra.mxu1 %v218_v5  ;;  %v212_v22 = vld [vmem:[%s740_s1 + $0x50] sm:$0xff]  ;;  %v229_v24 = vld [vmem:[%s741_s2 + $0x48] sm:$0xff]  ;;  %v228_v25 = vld [vmem:[%s741_s2 + $0x40] sm:$0xff] }
  0x14   : > { %503 = vmatpush.msra.mxu2 %v218_v5  ;;  %504 = vmatpush.msra.mxu3 %v218_v5  ;;  %v230_v23 = vld [vmem:[%s741_s2 + $0x50] sm:$0xff]  ;;  %v207_v27 = vld [vmem:[%s740_s1 + $0x28] sm:$0xff]  ;;  %v210_v28 = vld [vmem:[%s740_s1 + $0x40] sm:$0xff] }
  0x15   : > { %341 = vmatpush.msra.mxu0 %v217_v8  ;;  %505 = vmatpush.msra.mxu1 %v217_v8  ;;  %v204_v26 = vld [vmem:[%s740_s1 + $0x10] sm:$0xff]  ;;  %v213_v29 = vld [vmem:[%s740_s1 + $0x58] sm:$0xff] }
  0x16   : > { %249 = vperm.xlu1 %545, %v223_v6   ;;  %239 = vperm.xlu0 %544, %v221_v7   ;;  %v231_v30 = vld [vmem:[%s741_s2 + $0x58] sm:$0xff] }
  0x17   : > { %506 = vmatpush.msra.mxu2 %v217_v8  ;;  %507 = vmatpush.msra.mxu3 %v217_v8 }
  0x18   : > { %342 = vmatpush.msra.mxu0 %v216_v9  ;;  %508 = vmatpush.msra.mxu1 %v216_v9 }
  0x19   : > { %509 = vmatpush.msra.mxu2 %v216_v9  ;;  %510 = vmatpush.msra.mxu3 %v216_v9 }
  0x1a   : > { %343 = vmatpush.msra.mxu0 %v215_v10  ;;  %511 = vmatpush.msra.mxu1 %v215_v10 }
  0x1b   : > { %512 = vmatpush.msra.mxu2 %v215_v10  ;;  %513 = vmatpush.msra.mxu3 %v215_v10 }
  0x1c   : > { %344 = vmatpush.msra.mxu0 %v214_v11  ;;  %514 = vmatpush.msra.mxu1 %v214_v11 }
  0x1d   : > { %515 = vmatpush.msra.mxu2 %v214_v11  ;;  %516 = vmatpush.msra.mxu3 %v214_v11 }
  0x1e   : > { %485 = vmatmul.msk.f32.vlgmr.msra.gmra.mxu0 %vm292_vm0, %v202_v12  ;;  %488 = vmatmul.msk.f32.vlgmr.msra.gmra.mxu1 %vm292_vm0, %v205_v13 }
  0x1f   : > { %491 = vmatmul.msk.f32.vlgmr.msra.gmra.mxu2 %vm292_vm0, %v208_v14  ;;  %494 = vmatmul.msk.f32.vlgmr.msra.gmra.mxu3 %vm292_vm0, %v211_v15 }
  0x20   : > { %269 = vperm.xlu1 %545, %v227_v16   ;;  %264 = vperm.xlu0 %544, %v226_v17  }
  0x21   : > { %259 = vperm.xlu2 %546, %v225_v18  }
  0x26   : > { %486 = vmatmul.msk.f32.gmra.mxu0 %vm292_vm0, %v203_v19  ;;  %489 = vmatmul.msk.f32.gmra.mxu1 %vm292_vm0, %v206_v20 }
  0x27   : > { %492 = vmatmul.msk.f32.gmra.mxu2 %vm292_vm0, %v209_v21  ;;  %495 = vmatmul.msk.f32.gmra.mxu3 %vm292_vm0, %v212_v22 }
  0x28   : > { %284 = vperm.xlu1 %545, %v230_v23   ;;  %279 = vperm.xlu0 %544, %v229_v24  }
  0x29   : > { %274 = vperm.xlu2 %546, %v228_v25  }
  0x2e   : > { %487 = vmatmul.msk.f32.gmra.mxu0 %vm292_vm0, %v204_v26  ;;  %490 = vmatmul.msk.f32.gmra.mxu1 %vm292_vm0, %v207_v27 }
  0x2f   : > { %493 = vmatmul.msk.f32.gmra.mxu2 %vm292_vm0, %v210_v28  ;;  %496 = vmatmul.msk.f32.gmra.mxu3 %vm292_vm0, %v213_v29 }
  0x31   : > { %289 = vperm.xlu2 %546, %v231_v30  }
  0x6a   : > { %v255_v34 = vpop.permute.xlu2 %254 }
  0x7b   : > { %v260_v41 = vpop.permute.xlu2 %259 }
  0x80   : > { %v235_v31 = vpop.permute.xlu0 %234  ;;  %v245_v32 = vpop.permute.xlu1 %244 }
  0x83   : > { %v275_v52 = vpop.permute.xlu2 %274 }
  0x88   : > { %v240_v33 = vpop.permute.xlu0 %239  ;;  %v250_v35 = vpop.permute.xlu1 %249 }
  0x8b   : > { %v290_v62 = vpop.permute.xlu2 %289 }
  0x92   : > { %v265_v36 = vpop.permute.xlu0 %264  ;;  %v270_v42 = vpop.permute.xlu1 %269 }
  0x9a   : > { %v280_v43 = vpop.permute.xlu0 %279  ;;  %v285_v53 = vpop.permute.xlu1 %284 }
  0x9b   : > { %v346_v37 = vpop.f32.mrf.mxu0  ;;  %v355_v38 = vpop.f32.mrf.mxu1 }
  0x9c   : > { %v347_v39 = vadd.f32 %v346_v37, %v235_v31  ;;  %v356_v40 = vadd.f32 %v355_v38, %v250_v35 }
  0x9e   : > { %383 = vst.msk [vmem:[%s704_s25] sm:$0xff] %vm382_vm1, %v347_v39 }
  0x9f   : > { %386 = vst.msk [vmem:[%s704_s25 + $0x18] sm:$0xff] %vm382_vm1, %v356_v40 }
  0xa2   : > { %v364_v44 = vpop.f32.mrf.mxu2  ;;  %v373_v45 = vpop.f32.mrf.mxu3 }
  0xa3   : > { %v365_v46 = vadd.f32 %v364_v44, %v265_v36  ;;  %v374_v47 = vadd.f32 %v373_v45, %v280_v43  ;;  %v349_v48 = vpop.f32.mrf.mxu0  ;;  %v358_v49 = vpop.f32.mrf.mxu1 }
  0xa4   : > { %v350_v50 = vadd.f32 %v349_v48, %v240_v33  ;;  %v359_v51 = vadd.f32 %v358_v49, %v255_v34 }
  0xa5   : > { %389 = vst.msk [vmem:[%s704_s25 + $0x30] sm:$0xff] %vm382_vm1, %v365_v46 }
  0xa6   : > { %392 = vst.msk [vmem:[%s704_s25 + $0x48] sm:$0xff] %vm382_vm1, %v374_v47 }
  0xa7   : > { %384 = vst.msk [vmem:[%s704_s25 + $0x8] sm:$0xff] %vm382_vm1, %v350_v50 }
  0xa8   : > { %387 = vst.msk [vmem:[%s704_s25 + $0x20] sm:$0xff] %vm382_vm1, %v359_v51 }
  0xaa   : > { %v367_v54 = vpop.f32.mrf.mxu2  ;;  %v376_v55 = vpop.f32.mrf.mxu3 }
  0xab   : > { %v368_v56 = vadd.f32 %v367_v54, %v270_v42  ;;  %v377_v57 = vadd.f32 %v376_v55, %v285_v53  ;;  %v352_v58 = vpop.f32.mrf.mxu0  ;;  %v361_v59 = vpop.f32.mrf.mxu1 }
  0xac   : > { %v353_v60 = vadd.f32 %v352_v58, %v245_v32  ;;  %v362_v61 = vadd.f32 %v361_v59, %v260_v41 }
  0xad   : > { %390 = vst.msk [vmem:[%s704_s25 + $0x38] sm:$0xff] %vm382_vm1, %v368_v56 }
  0xae   : > { %393 = vst.msk [vmem:[%s704_s25 + $0x50] sm:$0xff] %vm382_vm1, %v377_v57 }
  0xaf   : > { %385 = vst.msk [vmem:[%s704_s25 + $0x10] sm:$0xff] %vm382_vm1, %v353_v60 }
  0xb0   : > { %388 = vst.msk [vmem:[%s704_s25 + $0x28] sm:$0xff] %vm382_vm1, %v362_v61 }
  0xb2   : > { %v370_v63 = vpop.f32.mrf.mxu2  ;;  %v379_v0 = vpop.f32.mrf.mxu3 }
  0xb3   : > { %v371_v1 = vadd.f32 %v370_v63, %v275_v52  ;;  %v380_v2 = vadd.f32 %v379_v0, %v290_v62 }
  0xb5   : > { %391 = vst.msk [vmem:[%s704_s25 + $0x40] sm:$0xff] %vm382_vm1, %v371_v1 }
  0xb6   : > { %394 = vst.msk [vmem:[%s704_s25 + $0x58] sm:$0xff] %vm382_vm1, %v380_v2 }
  0xb7 PF: > { %s13_s14 = sadd.s32 1, %s569_s14   ;;  %s743_s12 = smov %s565_s13 }
  0xb8   : > { %p10_p5 = scmp.ge.s32.totalorder %s13_s14, 4   ;;  %s744_s13 = smov %s746_s15 }
  0xba   :  { %12 = sbr.rel (!%p10_p5) target bundleno = 2 (0x2), region = 62 }

</bundles_post_ra>
